<compile_context>
chip_gen: v7x
topology: tpu7x:2x2x1
jax: 0.10.0
libtpu: 0.0.40
codegen_flags: <defaults>
</compile_context>

<pallas_src>
import functools
import math

import jax
import jax.numpy as jnp
from jax import lax
from jax.experimental import pallas as pl
from jax.experimental.pallas import tpu as pltpu


def _mha_kernel(xq_ref, xf_ref, wq_ref, bq_ref, wk_ref, bk_ref, wv_ref, bv_ref,
                wo_ref, bo_ref, out_ref, *, num_heads, key_dim, value_dim):
    """Grid = (B, S // q_tile). One (batch, query-tile) per step, no accumulation."""
    qi = pl.program_id(1)

    x_q = xq_ref[0]          # [tq, D]  rows of x for this query tile
    x_f = xf_ref[0]          # [S,  D]  full sequence (for K / V)
    tq = x_q.shape[0]
    seq_len = x_f.shape[0]

    scale = jnp.float32(1.0 / math.sqrt(float(key_dim)))

    # Fused, head-stacked projections (single wide MXU matmuls; weights are
    # pre-transposed in the wrapper so no transpose happens in-kernel).
    q = (jnp.dot(x_q, wq_ref[...], preferred_element_type=jnp.float32)
         + bq_ref[...]) * scale                                            # [tq, H*kd]
    k = jnp.dot(x_f, wk_ref[...], preferred_element_type=jnp.float32) \
        + bk_ref[...]                                                      # [S,  H*kd]
    v = jnp.dot(x_f, wv_ref[...], preferred_element_type=jnp.float32) \
        + bv_ref[...]                                                      # [S,  H*vd]

    # Causal mask computed in-kernel (cheap VPU work, zero HBM traffic).
    row = qi * tq + lax.broadcasted_iota(jnp.int32, (tq, seq_len), 0)
    col = lax.broadcasted_iota(jnp.int32, (tq, seq_len), 1)
    keep = row >= col                                                      # [tq, S]

    head_outs = []
    for h in range(num_heads):                      # unrolled; static lane slices
        qh = q[:, h * key_dim:(h + 1) * key_dim]                           # [tq, kd]
        kh = k[:, h * key_dim:(h + 1) * key_dim]                           # [S,  kd]
        vh = v[:, h * value_dim:(h + 1) * value_dim]                       # [S,  vd]

        # scores = qh @ kh^T without an explicit transpose.
        s = lax.dot_general(qh, kh, (((1,), (1,)), ((), ())),
                            preferred_element_type=jnp.float32)            # [tq, S]

        # Masked row-wise softmax; masked-out positions get exactly 0 weight,
        # fully-masked rows (cannot occur for causal, kept for generality)
        # produce an all-zero row.
        neg = jnp.where(keep, s, jnp.float32(-1e30))
        m = jnp.max(neg, axis=-1, keepdims=True)
        e = jnp.where(keep, jnp.exp(neg - m), jnp.float32(0.0))
        denom = jnp.sum(e, axis=-1, keepdims=True)
        inv = pl.reciprocal(jnp.where(denom > 0, denom, jnp.float32(1.0)),
                            approx=False)
        w = jnp.where(denom > 0, e * inv, jnp.float32(0.0))                # [tq, S]

        head_outs.append(jnp.dot(w, vh, preferred_element_type=jnp.float32))

    head_cat = jnp.concatenate(head_outs, axis=-1)                         # [tq, H*vd]

    # Single well-shaped output projection + bias; one unmasked write per tile.
    out = jnp.dot(head_cat, wo_ref[...], preferred_element_type=jnp.float32) \
        + bo_ref[...]
    out_ref[0] = out.astype(out_ref.dtype)


def naive_mha_pallas(x, wq, bq, wk, bk, wv, bv, wo_full, bo, *, q_tile=None):
    """x: [B,S,D]; wq/wk: [H,kd,D]; bq/bk: [H,kd]; wv: [H,vd,D]; bv: [H,vd];
    wo_full: [D, H*vd]; bo: [D].  Causal mask is built inside the kernel."""
    B, S, D = x.shape
    H, kd, _ = wq.shape
    vd = wv.shape[1]

    if q_tile is None:
        q_tile = S if S <= 128 else 128
    assert S % q_tile == 0, "sequence length must be divisible by q_tile"

    # Layout plumbing in the wrapper (free): fuse heads and pre-transpose so
    # the kernel feeds the MXU directly.
    wq_f = jnp.transpose(wq.reshape(H * kd, D))     # [D, H*kd]
    wk_f = jnp.transpose(wk.reshape(H * kd, D))     # [D, H*kd]
    wv_f = jnp.transpose(wv.reshape(H * vd, D))     # [D, H*vd]
    bq_f = bq.reshape(1, H * kd)
    bk_f = bk.reshape(1, H * kd)
    bv_f = bv.reshape(1, H * vd)
    wo_f = jnp.transpose(wo_full)                   # [H*vd, D]
    bo_f = bo.reshape(1, D)

    kernel = functools.partial(_mha_kernel, num_heads=H, key_dim=kd,
                               value_dim=vd)

    grid_spec = pltpu.PrefetchScalarGridSpec(
        num_scalar_prefetch=0,
        grid=(B, S // q_tile),
        in_specs=[
            pl.BlockSpec((1, q_tile, D), lambda b, qi: (b, qi, 0)),   # x (q rows)
            pl.BlockSpec((1, S, D),      lambda b, qi: (b, 0, 0)),    # x (full, K/V)
            pl.BlockSpec((D, H * kd),    lambda b, qi: (0, 0)),       # Wq fused
            pl.BlockSpec((1, H * kd),    lambda b, qi: (0, 0)),       # bq
            pl.BlockSpec((D, H * kd),    lambda b, qi: (0, 0)),       # Wk fused
            pl.BlockSpec((1, H * kd),    lambda b, qi: (0, 0)),       # bk
            pl.BlockSpec((D, H * vd),    lambda b, qi: (0, 0)),       # Wv fused
            pl.BlockSpec((1, H * vd),    lambda b, qi: (0, 0)),       # bv
            pl.BlockSpec((H * vd, D),    lambda b, qi: (0, 0)),       # Wo fused
            pl.BlockSpec((1, D),         lambda b, qi: (0, 0)),       # bo
        ],
        out_specs=pl.BlockSpec((1, q_tile, D), lambda b, qi: (b, qi, 0)),
    )

    return pl.pallas_call(
        kernel,
        out_shape=jax.ShapeDtypeStruct((B, S, D), jnp.float32),
        grid_spec=grid_spec,
        compiler_params=pltpu.CompilerParams(
            dimension_semantics=("parallel", "parallel")),
    )(x, x, wq_f, bq_f, wk_f, bk_f, wv_f, bv_f, wo_f, bo_f)


def naive_mha_reference(x, wq, bq, wk, bk, wv, bv, wo_full, bo, mask):
    """Plain-JAX reference mirroring the PyTorch loops (vectorized)."""
    B, S, _ = x.shape
    H, kd, _ = wq.shape
    vd = wv.shape[1]
    q = jnp.einsum("bsd,hkd->bhsk", x, wq) + bq[None, :, None, :]
    k = jnp.einsum("bsd,hkd->bhsk", x, wk) + bk[None, :, None, :]
    v = jnp.einsum("bsd,hvd->bhsv", x, wv) + bv[None, :, None, :]
    scores = jnp.einsum("bhik,bhjk->bhij", q, k) / jnp.sqrt(jnp.float32(kd))
    keep = mask != 0
    neg = jnp.where(keep, scores, -1e30)
    m = jnp.max(neg, axis=-1, keepdims=True)
    e = jnp.where(keep, jnp.exp(neg - m), 0.0)
    denom = jnp.sum(e, axis=-1, keepdims=True)
    w = jnp.where(denom > 0, e / jnp.where(denom > 0, denom, 1.0), 0.0)
    head_out = jnp.einsum("bhij,bhjv->bhiv", w, v)                 # [B,H,S,vd]
    concat = jnp.transpose(head_out, (0, 2, 1, 3)).reshape(B, S, H * vd)
    return concat @ wo_full.T + bo[None, None, :]


if __name__ == "__main__":
    # Small shapes consistent with the module.
    B, S = 2, 8
    d_model, num_heads, key_dim, value_dim = 32, 4, 8, 8

    key = jax.random.PRNGKey(0)
    keys = jax.random.split(key, 10)

    def linear_init(k, out_f, in_f):
        bound = 1.0 / math.sqrt(in_f)
        kw, kb = jax.random.split(k)
        w = jax.random.uniform(kw, (out_f, in_f), jnp.float32, -bound, bound)
        b = jax.random.uniform(kb, (out_f,), jnp.float32, -bound, bound)
        return w, b

    # Stack per-head Linear(d_model -> key_dim/value_dim) params deterministically.
    wq_list, bq_list, wk_list, bk_list, wv_list, bv_list = [], [], [], [], [], []
    hkeys = jax.random.split(keys[0], num_heads * 3)
    for h in range(num_heads):
        w, b = linear_init(hkeys[3 * h + 0], key_dim, d_model); wq_list.append(w); bq_list.append(b)
        w, b = linear_init(hkeys[3 * h + 1], key_dim, d_model); wk_list.append(w); bk_list.append(b)
        w, b = linear_init(hkeys[3 * h + 2], value_dim, d_model); wv_list.append(w); bv_list.append(b)
    wq = jnp.stack(wq_list); bq = jnp.stack(bq_list)          # [H,kd,D], [H,kd]
    wk = jnp.stack(wk_list); bk = jnp.stack(bk_list)
    wv = jnp.stack(wv_list); bv = jnp.stack(bv_list)          # [H,vd,D], [H,vd]

    wo_full, bo_full = linear_init(keys[1], d_model, num_heads * value_dim)  # [D, H*vd], [D]

    x = jax.random.normal(keys[2], (B, S, d_model), jnp.float32)

    out = naive_mha_pallas(x, wq, bq, wk, bk, wv, bv, wo_full, bo_full)
    out = jax.block_until_ready(out)

    # Reference uses an explicit causal mask (the kernel builds it internally).
    causal = jnp.tril(jnp.ones((S, S), jnp.int32))
    mask = jnp.broadcast_to(causal[None, None], (B, num_heads, S, S)).astype(jnp.int32)
    ref = naive_mha_reference(x, wq, bq, wk, bk, wv, bv, wo_full, bo_full, mask)

    assert out.shape == (B, S, d_model)
    assert jnp.allclose(out, ref, atol=1e-4, rtol=1e-4), "mismatch vs reference"

    print("KERNEL_OK")
</pallas_src>

<mosaic_0001>
module attributes {stable_mosaic.version = 11 : i64} {
  func.func @_mha_kernel(%arg0: i32, %arg1: i32, %arg2: memref<1x8x32xf32, #tpu.memory_space<vmem>>, %arg3: memref<1x8x32xf32, #tpu.memory_space<vmem>>, %arg4: memref<32x32xf32, #tpu.memory_space<vmem>>, %arg5: memref<1x32xf32, #tpu.memory_space<vmem>>, %arg6: memref<32x32xf32, #tpu.memory_space<vmem>>, %arg7: memref<1x32xf32, #tpu.memory_space<vmem>>, %arg8: memref<32x32xf32, #tpu.memory_space<vmem>>, %arg9: memref<1x32xf32, #tpu.memory_space<vmem>>, %arg10: memref<32x32xf32, #tpu.memory_space<vmem>>, %arg11: memref<1x32xf32, #tpu.memory_space<vmem>>, %arg12: memref<1x8x32xf32, #tpu.memory_space<vmem>>) attributes {dimension_semantics = [#tpu.dimension_semantics<parallel>, #tpu.dimension_semantics<parallel>], iteration_bounds = array<i64: 2, 1>, scalar_prefetch = 0 : i64, scratch_operands = 0 : i64, tpu.core_type = #tpu.core_type<tc>, window_params = [{transform_indices = @transform_0, window_bounds = array<i64: 1, 8, 32>}, {transform_indices = @transform_1, window_bounds = array<i64: 1, 8, 32>}, {pipeline_mode = #tpu.pipeline_mode<synchronous>, transform_indices = @transform_2, window_bounds = array<i64: 32, 32>}, {pipeline_mode = #tpu.pipeline_mode<synchronous>, transform_indices = @transform_3, window_bounds = array<i64: 1, 32>}, {pipeline_mode = #tpu.pipeline_mode<synchronous>, transform_indices = @transform_4, window_bounds = array<i64: 32, 32>}, {pipeline_mode = #tpu.pipeline_mode<synchronous>, transform_indices = @transform_5, window_bounds = array<i64: 1, 32>}, {pipeline_mode = #tpu.pipeline_mode<synchronous>, transform_indices = @transform_6, window_bounds = array<i64: 32, 32>}, {pipeline_mode = #tpu.pipeline_mode<synchronous>, transform_indices = @transform_7, window_bounds = array<i64: 1, 32>}, {pipeline_mode = #tpu.pipeline_mode<synchronous>, transform_indices = @transform_8, window_bounds = array<i64: 32, 32>}, {pipeline_mode = #tpu.pipeline_mode<synchronous>, transform_indices = @transform_9, window_bounds = array<i64: 1, 32>}, {transform_indices = @transform_10, window_bounds = array<i64: 1, 8, 32>}]} {
    %c0 = arith.constant 0 : index
    %c0_0 = arith.constant 0 : index
    %c0_1 = arith.constant 0 : index
    %0 = vector.load %arg2[%c0, %c0_0, %c0_1] : memref<1x8x32xf32, #tpu.memory_space<vmem>>, vector<1x8x32xf32>
    %1 = vector.shape_cast %0 : vector<1x8x32xf32> to vector<8x32xf32>
    %c0_2 = arith.constant 0 : index
    %c0_3 = arith.constant 0 : index
    %c0_4 = arith.constant 0 : index
    %2 = vector.load %arg3[%c0_2, %c0_3, %c0_4] : memref<1x8x32xf32, #tpu.memory_space<vmem>>, vector<1x8x32xf32>
    %3 = vector.shape_cast %2 : vector<1x8x32xf32> to vector<8x32xf32>
    %c0_5 = arith.constant 0 : index
    %c0_6 = arith.constant 0 : index
    %4 = vector.load %arg4[%c0_5, %c0_6] : memref<32x32xf32, #tpu.memory_space<vmem>>, vector<32x32xf32>
    %cst = arith.constant dense<0.000000e+00> : vector<8x32xf32>
    %5 = tpu.matmul %1, %4, %cst {dimension_numbers = #tpu.dot_dimension_numbers<[1], [0], [0], [1], [0, 0, 1, 1], [], []>} : vector<8x32xf32>, vector<32x32xf32>, vector<8x32xf32> -> vector<8x32xf32>
    %c0_7 = arith.constant 0 : index
    %c0_8 = arith.constant 0 : index
    %6 = vector.load %arg5[%c0_7, %c0_8] : memref<1x32xf32, #tpu.memory_space<vmem>>, vector<1x32xf32>
    %7 = vector.broadcast %6 : vector<1x32xf32> to vector<8x32xf32>
    %8 = arith.addf %5, %7 : vector<8x32xf32>
    %cst_9 = arith.constant 0.353553385 : f32
    %9 = vector.broadcast %cst_9 : f32 to vector<8x32xf32>
    %10 = arith.mulf %8, %9 : vector<8x32xf32>
    %c0_10 = arith.constant 0 : index
    %c0_11 = arith.constant 0 : index
    %11 = vector.load %arg6[%c0_10, %c0_11] : memref<32x32xf32, #tpu.memory_space<vmem>>, vector<32x32xf32>
    %cst_12 = arith.constant dense<0.000000e+00> : vector<8x32xf32>
    %12 = tpu.matmul %3, %11, %cst_12 {dimension_numbers = #tpu.dot_dimension_numbers<[1], [0], [0], [1], [0, 0, 1, 1], [], []>} : vector<8x32xf32>, vector<32x32xf32>, vector<8x32xf32> -> vector<8x32xf32>
    %c0_13 = arith.constant 0 : index
    %c0_14 = arith.constant 0 : index
    %13 = vector.load %arg7[%c0_13, %c0_14] : memref<1x32xf32, #tpu.memory_space<vmem>>, vector<1x32xf32>
    %14 = vector.broadcast %13 : vector<1x32xf32> to vector<8x32xf32>
    %15 = arith.addf %12, %14 : vector<8x32xf32>
    %c0_15 = arith.constant 0 : index
    %c0_16 = arith.constant 0 : index
    %16 = vector.load %arg8[%c0_15, %c0_16] : memref<32x32xf32, #tpu.memory_space<vmem>>, vector<32x32xf32>
    %cst_17 = arith.constant dense<0.000000e+00> : vector<8x32xf32>
    %17 = tpu.matmul %3, %16, %cst_17 {dimension_numbers = #tpu.dot_dimension_numbers<[1], [0], [0], [1], [0, 0, 1, 1], [], []>} : vector<8x32xf32>, vector<32x32xf32>, vector<8x32xf32> -> vector<8x32xf32>
    %c0_18 = arith.constant 0 : index
    %c0_19 = arith.constant 0 : index
    %18 = vector.load %arg9[%c0_18, %c0_19] : memref<1x32xf32, #tpu.memory_space<vmem>>, vector<1x32xf32>
    %19 = vector.broadcast %18 : vector<1x32xf32> to vector<8x32xf32>
    %20 = arith.addf %17, %19 : vector<8x32xf32>
    %c8_i32 = arith.constant 8 : i32
    %21 = arith.muli %arg1, %c8_i32 : i32
    %22 = tpu.iota {dimensions = array<i32: 0>} : vector<8x8xi32>
    %23 = vector.broadcast %21 : i32 to vector<8x8xi32>
    %24 = arith.addi %23, %22 : vector<8x8xi32>
    %25 = tpu.iota {dimensions = array<i32: 1>} : vector<8x8xi32>
    %26 = arith.cmpi sge, %24, %25 : vector<8x8xi32>
    %27 = vector.extract_strided_slice %10 {offsets = [0, 0], sizes = [8, 8], strides = [1, 1]} : vector<8x32xf32> to vector<8x8xf32>
    %28 = vector.extract_strided_slice %15 {offsets = [0, 0], sizes = [8, 8], strides = [1, 1]} : vector<8x32xf32> to vector<8x8xf32>
    %29 = vector.extract_strided_slice %20 {offsets = [0, 0], sizes = [8, 8], strides = [1, 1]} : vector<8x32xf32> to vector<8x8xf32>
    %cst_20 = arith.constant dense<0.000000e+00> : vector<8x8xf32>
    %30 = tpu.matmul %27, %28, %cst_20 {dimension_numbers = #tpu.dot_dimension_numbers<[1], [1], [0], [0], [0, 0, 1, 0], [], []>} : vector<8x8xf32>, vector<8x8xf32>, vector<8x8xf32> -> vector<8x8xf32>
    %cst_21 = arith.constant -1.000000e+30 : f32
    %31 = vector.broadcast %cst_21 : f32 to vector<8x8xf32>
    %32 = arith.select %26, %30, %31 : vector<8x8xi1>, vector<8x8xf32>
    %cst_22 = arith.constant dense<0xFF800000> : vector<8xf32>
    %33 = vector.multi_reduction <maximumf>, %32, %cst_22 [1] : vector<8x8xf32> to vector<8xf32>
    %34 = vector.shape_cast %33 : vector<8xf32> to vector<8x1xf32>
    %35 = vector.broadcast %34 : vector<8x1xf32> to vector<8x8xf32>
    %36 = arith.subf %32, %35 : vector<8x8xf32>
    %37 = math.exp %36 : vector<8x8xf32>
    %cst_23 = arith.constant 0.000000e+00 : f32
    %38 = vector.broadcast %cst_23 : f32 to vector<8x8xf32>
    %39 = arith.select %26, %37, %38 : vector<8x8xi1>, vector<8x8xf32>
    %cst_24 = arith.constant dense<0.000000e+00> : vector<8xf32>
    %40 = vector.multi_reduction <add>, %39, %cst_24 [1] : vector<8x8xf32> to vector<8xf32>
    %41 = vector.shape_cast %40 : vector<8xf32> to vector<8x1xf32>
    %cst_25 = arith.constant 0.000000e+00 : f32
    %42 = vector.broadcast %cst_25 : f32 to vector<8x1xf32>
    %43 = arith.cmpf ogt, %41, %42 : vector<8x1xf32>
    %cst_26 = arith.constant 1.000000e+00 : f32
    %44 = vector.broadcast %cst_26 : f32 to vector<8x1xf32>
    %45 = arith.select %43, %41, %44 : vector<8x1xi1>, vector<8x1xf32>
    %46 = tpu.reciprocal %45 : vector<8x1xf32> -> vector<8x1xf32>
    %cst_27 = arith.constant 0.000000e+00 : f32
    %47 = vector.broadcast %cst_27 : f32 to vector<8x1xf32>
    %48 = arith.cmpf ogt, %41, %47 : vector<8x1xf32>
    %49 = vector.broadcast %46 : vector<8x1xf32> to vector<8x8xf32>
    %50 = arith.mulf %39, %49 : vector<8x8xf32>
    %cst_28 = arith.constant 0.000000e+00 : f32
    %51 = vector.shape_cast %48 : vector<8x1xi1> to vector<8x1xi1>
    %52 = vector.broadcast %51 : vector<8x1xi1> to vector<8x8xi1>
    %53 = vector.broadcast %cst_28 : f32 to vector<8x8xf32>
    %54 = arith.select %52, %50, %53 : vector<8x8xi1>, vector<8x8xf32>
    %cst_29 = arith.constant dense<0.000000e+00> : vector<8x8xf32>
    %55 = tpu.matmul %54, %29, %cst_29 {dimension_numbers = #tpu.dot_dimension_numbers<[1], [0], [0], [1], [0, 0, 1, 1], [], []>} : vector<8x8xf32>, vector<8x8xf32>, vector<8x8xf32> -> vector<8x8xf32>
    %56 = vector.extract_strided_slice %10 {offsets = [0, 8], sizes = [8, 8], strides = [1, 1]} : vector<8x32xf32> to vector<8x8xf32>
    %57 = vector.extract_strided_slice %15 {offsets = [0, 8], sizes = [8, 8], strides = [1, 1]} : vector<8x32xf32> to vector<8x8xf32>
    %58 = vector.extract_strided_slice %20 {offsets = [0, 8], sizes = [8, 8], strides = [1, 1]} : vector<8x32xf32> to vector<8x8xf32>
    %cst_30 = arith.constant dense<0.000000e+00> : vector<8x8xf32>
    %59 = tpu.matmul %56, %57, %cst_30 {dimension_numbers = #tpu.dot_dimension_numbers<[1], [1], [0], [0], [0, 0, 1, 0], [], []>} : vector<8x8xf32>, vector<8x8xf32>, vector<8x8xf32> -> vector<8x8xf32>
    %cst_31 = arith.constant -1.000000e+30 : f32
    %60 = vector.broadcast %cst_31 : f32 to vector<8x8xf32>
    %61 = arith.select %26, %59, %60 : vector<8x8xi1>, vector<8x8xf32>
    %cst_32 = arith.constant dense<0xFF800000> : vector<8xf32>
    %62 = vector.multi_reduction <maximumf>, %61, %cst_32 [1] : vector<8x8xf32> to vector<8xf32>
    %63 = vector.shape_cast %62 : vector<8xf32> to vector<8x1xf32>
    %64 = vector.broadcast %63 : vector<8x1xf32> to vector<8x8xf32>
    %65 = arith.subf %61, %64 : vector<8x8xf32>
    %66 = math.exp %65 : vector<8x8xf32>
    %cst_33 = arith.constant 0.000000e+00 : f32
    %67 = vector.broadcast %cst_33 : f32 to vector<8x8xf32>
    %68 = arith.select %26, %66, %67 : vector<8x8xi1>, vector<8x8xf32>
    %cst_34 = arith.constant dense<0.000000e+00> : vector<8xf32>
    %69 = vector.multi_reduction <add>, %68, %cst_34 [1] : vector<8x8xf32> to vector<8xf32>
    %70 = vector.shape_cast %69 : vector<8xf32> to vector<8x1xf32>
    %cst_35 = arith.constant 0.000000e+00 : f32
    %71 = vector.broadcast %cst_35 : f32 to vector<8x1xf32>
    %72 = arith.cmpf ogt, %70, %71 : vector<8x1xf32>
    %cst_36 = arith.constant 1.000000e+00 : f32
    %73 = vector.broadcast %cst_36 : f32 to vector<8x1xf32>
    %74 = arith.select %72, %70, %73 : vector<8x1xi1>, vector<8x1xf32>
    %75 = tpu.reciprocal %74 : vector<8x1xf32> -> vector<8x1xf32>
    %cst_37 = arith.constant 0.000000e+00 : f32
    %76 = vector.broadcast %cst_37 : f32 to vector<8x1xf32>
    %77 = arith.cmpf ogt, %70, %76 : vector<8x1xf32>
    %78 = vector.broadcast %75 : vector<8x1xf32> to vector<8x8xf32>
    %79 = arith.mulf %68, %78 : vector<8x8xf32>
    %cst_38 = arith.constant 0.000000e+00 : f32
    %80 = vector.shape_cast %77 : vector<8x1xi1> to vector<8x1xi1>
    %81 = vector.broadcast %80 : vector<8x1xi1> to vector<8x8xi1>
    %82 = vector.broadcast %cst_38 : f32 to vector<8x8xf32>
    %83 = arith.select %81, %79, %82 : vector<8x8xi1>, vector<8x8xf32>
    %cst_39 = arith.constant dense<0.000000e+00> : vector<8x8xf32>
    %84 = tpu.matmul %83, %58, %cst_39 {dimension_numbers = #tpu.dot_dimension_numbers<[1], [0], [0], [1], [0, 0, 1, 1], [], []>} : vector<8x8xf32>, vector<8x8xf32>, vector<8x8xf32> -> vector<8x8xf32>
    %85 = vector.extract_strided_slice %10 {offsets = [0, 16], sizes = [8, 8], strides = [1, 1]} : vector<8x32xf32> to vector<8x8xf32>
    %86 = vector.extract_strided_slice %15 {offsets = [0, 16], sizes = [8, 8], strides = [1, 1]} : vector<8x32xf32> to vector<8x8xf32>
    %87 = vector.extract_strided_slice %20 {offsets = [0, 16], sizes = [8, 8], strides = [1, 1]} : vector<8x32xf32> to vector<8x8xf32>
    %cst_40 = arith.constant dense<0.000000e+00> : vector<8x8xf32>
    %88 = tpu.matmul %85, %86, %cst_40 {dimension_numbers = #tpu.dot_dimension_numbers<[1], [1], [0], [0], [0, 0, 1, 0], [], []>} : vector<8x8xf32>, vector<8x8xf32>, vector<8x8xf32> -> vector<8x8xf32>
    %cst_41 = arith.constant -1.000000e+30 : f32
    %89 = vector.broadcast %cst_41 : f32 to vector<8x8xf32>
    %90 = arith.select %26, %88, %89 : vector<8x8xi1>, vector<8x8xf32>
    %cst_42 = arith.constant dense<0xFF800000> : vector<8xf32>
    %91 = vector.multi_reduction <maximumf>, %90, %cst_42 [1] : vector<8x8xf32> to vector<8xf32>
    %92 = vector.shape_cast %91 : vector<8xf32> to vector<8x1xf32>
    %93 = vector.broadcast %92 : vector<8x1xf32> to vector<8x8xf32>
    %94 = arith.subf %90, %93 : vector<8x8xf32>
    %95 = math.exp %94 : vector<8x8xf32>
    %cst_43 = arith.constant 0.000000e+00 : f32
    %96 = vector.broadcast %cst_43 : f32 to vector<8x8xf32>
    %97 = arith.select %26, %95, %96 : vector<8x8xi1>, vector<8x8xf32>
    %cst_44 = arith.constant dense<0.000000e+00> : vector<8xf32>
    %98 = vector.multi_reduction <add>, %97, %cst_44 [1] : vector<8x8xf32> to vector<8xf32>
    %99 = vector.shape_cast %98 : vector<8xf32> to vector<8x1xf32>
    %cst_45 = arith.constant 0.000000e+00 : f32
    %100 = vector.broadcast %cst_45 : f32 to vector<8x1xf32>
    %101 = arith.cmpf ogt, %99, %100 : vector<8x1xf32>
    %cst_46 = arith.constant 1.000000e+00 : f32
    %102 = vector.broadcast %cst_46 : f32 to vector<8x1xf32>
    %103 = arith.select %101, %99, %102 : vector<8x1xi1>, vector<8x1xf32>
    %104 = tpu.reciprocal %103 : vector<8x1xf32> -> vector<8x1xf32>
    %cst_47 = arith.constant 0.000000e+00 : f32
    %105 = vector.broadcast %cst_47 : f32 to vector<8x1xf32>
    %106 = arith.cmpf ogt, %99, %105 : vector<8x1xf32>
    %107 = vector.broadcast %104 : vector<8x1xf32> to vector<8x8xf32>
    %108 = arith.mulf %97, %107 : vector<8x8xf32>
    %cst_48 = arith.constant 0.000000e+00 : f32
    %109 = vector.shape_cast %106 : vector<8x1xi1> to vector<8x1xi1>
    %110 = vector.broadcast %109 : vector<8x1xi1> to vector<8x8xi1>
    %111 = vector.broadcast %cst_48 : f32 to vector<8x8xf32>
    %112 = arith.select %110, %108, %111 : vector<8x8xi1>, vector<8x8xf32>
    %cst_49 = arith.constant dense<0.000000e+00> : vector<8x8xf32>
    %113 = tpu.matmul %112, %87, %cst_49 {dimension_numbers = #tpu.dot_dimension_numbers<[1], [0], [0], [1], [0, 0, 1, 1], [], []>} : vector<8x8xf32>, vector<8x8xf32>, vector<8x8xf32> -> vector<8x8xf32>
    %114 = vector.extract_strided_slice %10 {offsets = [0, 24], sizes = [8, 8], strides = [1, 1]} : vector<8x32xf32> to vector<8x8xf32>
    %115 = vector.extract_strided_slice %15 {offsets = [0, 24], sizes = [8, 8], strides = [1, 1]} : vector<8x32xf32> to vector<8x8xf32>
    %116 = vector.extract_strided_slice %20 {offsets = [0, 24], sizes = [8, 8], strides = [1, 1]} : vector<8x32xf32> to vector<8x8xf32>
    %cst_50 = arith.constant dense<0.000000e+00> : vector<8x8xf32>
    %117 = tpu.matmul %114, %115, %cst_50 {dimension_numbers = #tpu.dot_dimension_numbers<[1], [1], [0], [0], [0, 0, 1, 0], [], []>} : vector<8x8xf32>, vector<8x8xf32>, vector<8x8xf32> -> vector<8x8xf32>
    %cst_51 = arith.constant -1.000000e+30 : f32
    %118 = vector.broadcast %cst_51 : f32 to vector<8x8xf32>
    %119 = arith.select %26, %117, %118 : vector<8x8xi1>, vector<8x8xf32>
    %cst_52 = arith.constant dense<0xFF800000> : vector<8xf32>
    %120 = vector.multi_reduction <maximumf>, %119, %cst_52 [1] : vector<8x8xf32> to vector<8xf32>
    %121 = vector.shape_cast %120 : vector<8xf32> to vector<8x1xf32>
    %122 = vector.broadcast %121 : vector<8x1xf32> to vector<8x8xf32>
    %123 = arith.subf %119, %122 : vector<8x8xf32>
    %124 = math.exp %123 : vector<8x8xf32>
    %cst_53 = arith.constant 0.000000e+00 : f32
    %125 = vector.broadcast %cst_53 : f32 to vector<8x8xf32>
    %126 = arith.select %26, %124, %125 : vector<8x8xi1>, vector<8x8xf32>
    %cst_54 = arith.constant dense<0.000000e+00> : vector<8xf32>
    %127 = vector.multi_reduction <add>, %126, %cst_54 [1] : vector<8x8xf32> to vector<8xf32>
    %128 = vector.shape_cast %127 : vector<8xf32> to vector<8x1xf32>
    %cst_55 = arith.constant 0.000000e+00 : f32
    %129 = vector.broadcast %cst_55 : f32 to vector<8x1xf32>
    %130 = arith.cmpf ogt, %128, %129 : vector<8x1xf32>
    %cst_56 = arith.constant 1.000000e+00 : f32
    %131 = vector.broadcast %cst_56 : f32 to vector<8x1xf32>
    %132 = arith.select %130, %128, %131 : vector<8x1xi1>, vector<8x1xf32>
    %133 = tpu.reciprocal %132 : vector<8x1xf32> -> vector<8x1xf32>
    %cst_57 = arith.constant 0.000000e+00 : f32
    %134 = vector.broadcast %cst_57 : f32 to vector<8x1xf32>
    %135 = arith.cmpf ogt, %128, %134 : vector<8x1xf32>
    %136 = vector.broadcast %133 : vector<8x1xf32> to vector<8x8xf32>
    %137 = arith.mulf %126, %136 : vector<8x8xf32>
    %cst_58 = arith.constant 0.000000e+00 : f32
    %138 = vector.shape_cast %135 : vector<8x1xi1> to vector<8x1xi1>
    %139 = vector.broadcast %138 : vector<8x1xi1> to vector<8x8xi1>
    %140 = vector.broadcast %cst_58 : f32 to vector<8x8xf32>
    %141 = arith.select %139, %137, %140 : vector<8x8xi1>, vector<8x8xf32>
    %cst_59 = arith.constant dense<0.000000e+00> : vector<8x8xf32>
    %142 = tpu.matmul %141, %116, %cst_59 {dimension_numbers = #tpu.dot_dimension_numbers<[1], [0], [0], [1], [0, 0, 1, 1], [], []>} : vector<8x8xf32>, vector<8x8xf32>, vector<8x8xf32> -> vector<8x8xf32>
    %143 = tpu.concatenate %55, %84, %113, %142 in 1 : vector<8x8xf32>, vector<8x8xf32>, vector<8x8xf32>, vector<8x8xf32> -> vector<8x32xf32>
    %c0_60 = arith.constant 0 : index
    %c0_61 = arith.constant 0 : index
    %144 = vector.load %arg10[%c0_60, %c0_61] : memref<32x32xf32, #tpu.memory_space<vmem>>, vector<32x32xf32>
    %cst_62 = arith.constant dense<0.000000e+00> : vector<8x32xf32>
    %145 = tpu.matmul %143, %144, %cst_62 {dimension_numbers = #tpu.dot_dimension_numbers<[1], [0], [0], [1], [0, 0, 1, 1], [], []>} : vector<8x32xf32>, vector<32x32xf32>, vector<8x32xf32> -> vector<8x32xf32>
    %c0_63 = arith.constant 0 : index
    %c0_64 = arith.constant 0 : index
    %146 = vector.load %arg11[%c0_63, %c0_64] : memref<1x32xf32, #tpu.memory_space<vmem>>, vector<1x32xf32>
    %147 = vector.broadcast %146 : vector<1x32xf32> to vector<8x32xf32>
    %148 = arith.addf %145, %147 : vector<8x32xf32>
    %c0_65 = arith.constant 0 : index
    %c0_66 = arith.constant 0 : index
    %c0_67 = arith.constant 0 : index
    %149 = vector.load %arg12[%c0_65, %c0_66, %c0_67] : memref<1x8x32xf32, #tpu.memory_space<vmem>>, vector<1x8x32xf32>
    %150 = vector.shape_cast %149 : vector<1x8x32xf32> to vector<8x32xf32>
    %151 = vector.shape_cast %148 : vector<8x32xf32> to vector<1x8x32xf32>
    tpu.vector_store %arg12[%c0_65, %c0_66, %c0_67], %151 {strides = array<i32>} : memref<1x8x32xf32, #tpu.memory_space<vmem>>, vector<1x8x32xf32>,
    return
  }
  func.func @transform_0(%arg0: i32, %arg1: i32) -> (i32, i32, i32) {
    %c0_i32 = arith.constant 0 : i32
    %c0_i32_0 = arith.constant 0 : i32
    return %arg0, %arg1, %c0_i32 : i32, i32, i32
  }
  func.func @transform_1(%arg0: i32, %arg1: i32) -> (i32, i32, i32) {
    %c0_i32 = arith.constant 0 : i32
    %c0_i32_0 = arith.constant 0 : i32
    %c0_i32_1 = arith.constant 0 : i32
    return %arg0, %c0_i32, %c0_i32_0 : i32, i32, i32
  }
  func.func @transform_2(%arg0: i32, %arg1: i32) -> (i32, i32) {
    %c0_i32 = arith.constant 0 : i32
    %c0_i32_0 = arith.constant 0 : i32
    %c0_i32_1 = arith.constant 0 : i32
    return %c0_i32, %c0_i32_0 : i32, i32
  }
  func.func @transform_3(%arg0: i32, %arg1: i32) -> (i32, i32) {
    %c0_i32 = arith.constant 0 : i32
    %c0_i32_0 = arith.constant 0 : i32
    %c0_i32_1 = arith.constant 0 : i32
    return %c0_i32, %c0_i32_0 : i32, i32
  }
  func.func @transform_4(%arg0: i32, %arg1: i32) -> (i32, i32) {
    %c0_i32 = arith.constant 0 : i32
    %c0_i32_0 = arith.constant 0 : i32
    %c0_i32_1 = arith.constant 0 : i32
    return %c0_i32, %c0_i32_0 : i32, i32
  }
  func.func @transform_5(%arg0: i32, %arg1: i32) -> (i32, i32) {
    %c0_i32 = arith.constant 0 : i32
    %c0_i32_0 = arith.constant 0 : i32
    %c0_i32_1 = arith.constant 0 : i32
    return %c0_i32, %c0_i32_0 : i32, i32
  }
  func.func @transform_6(%arg0: i32, %arg1: i32) -> (i32, i32) {
    %c0_i32 = arith.constant 0 : i32
    %c0_i32_0 = arith.constant 0 : i32
    %c0_i32_1 = arith.constant 0 : i32
    return %c0_i32, %c0_i32_0 : i32, i32
  }
  func.func @transform_7(%arg0: i32, %arg1: i32) -> (i32, i32) {
    %c0_i32 = arith.constant 0 : i32
    %c0_i32_0 = arith.constant 0 : i32
    %c0_i32_1 = arith.constant 0 : i32
    return %c0_i32, %c0_i32_0 : i32, i32
  }
  func.func @transform_8(%arg0: i32, %arg1: i32) -> (i32, i32) {
    %c0_i32 = arith.constant 0 : i32
    %c0_i32_0 = arith.constant 0 : i32
    %c0_i32_1 = arith.constant 0 : i32
    return %c0_i32, %c0_i32_0 : i32, i32
  }
  func.func @transform_9(%arg0: i32, %arg1: i32) -> (i32, i32) {
    %c0_i32 = arith.constant 0 : i32
    %c0_i32_0 = arith.constant 0 : i32
    %c0_i32_1 = arith.constant 0 : i32
    return %c0_i32, %c0_i32_0 : i32, i32
  }
  func.func @transform_10(%arg0: i32, %arg1: i32) -> (i32, i32, i32) {
    %c0_i32 = arith.constant 0 : i32
    %c0_i32_0 = arith.constant 0 : i32
    return %arg0, %arg1, %c0_i32 : i32, i32, i32
  }
}

</mosaic_0001>

<bundles_post_ra>
// kernel: tpu_custom_call.1
= control target key start
LH: loop header
LB: loop body
LE: loop exit
PB: predicated region body
PF: predicated region fallthrough
CT: control target
= control target key end

     0   :  { %s2831_s0 = inlined_call_operand.hbm [shape: f32[2,8,32], index: 0, kind: input, shape index: {}]   ;;  %s2832_s1 = inlined_call_operand.hbm [shape: f32[2,8,32], index: 1, kind: input, shape index: {}]   ;;  %s2833_s2 = inlined_call_operand.hbm [shape: f32[32,32], index: 2, kind: input, shape index: {}]   ;;  %s2834_s3 = inlined_call_operand.vmem [shape: f32[1,32], index: 3, kind: input, shape index: {}]   ;;  %s2835_s4 = inlined_call_operand.hbm [shape: f32[32,32], index: 4, kind: input, shape index: {}]   ;;  %s2836_s5 = inlined_call_operand.vmem [shape: f32[1,32], index: 5, kind: input, shape index: {}]   ;;  %s2837_s6 = inlined_call_operand.hbm [shape: f32[32,32], index: 6, kind: input, shape index: {}]   ;;  %s2838_s7 = inlined_call_operand.vmem [shape: f32[1,32], index: 7, kind: input, shape index: {}]   ;;  %s2839_s8 = inlined_call_operand.hbm [shape: f32[32,32], index: 8, kind: input, shape index: {}]   ;;  %s2840_s9 = inlined_call_operand.vmem [shape: f32[1,32], index: 9, kind: input, shape index: {}]   ;;  %s2841_s10 = inlined_call_operand.hbm [shape: f32[2,8,32], index: 10, kind: output, shape index: {}]  }
   0x1   :  { %2848 = sst [smem:[#allocation22_spill]] %s2833_s2 }
   0x2   :  { %2849 = sst [smem:[#allocation23_spill]] %s2835_s4 }
   0x3   :  { %2850 = sst [smem:[#allocation24_spill]] %s2837_s6 }
   0x4   :  { %2851 = sst [smem:[#allocation25_spill]] %s2838_s7 }
   0x5   :  { %2852 = sst [smem:[#allocation26_spill]] %s2839_s8 }
   0x6   :  { %2853 = sst [smem:[#allocation27_spill]] %s2840_s9 }
   0x7   :  { %2854 = sst [smem:[#allocation28_spill]] %s2841_s10 }
   0x8   :  { %15 = vsyncpa [#allocation3], 0 }
   0x9   :  { %17 = vsyncpa [#allocation3 + $0x1], 0 }
   0xa   :  { %18 = vsyncpa [#allocation6], 0 }
   0xb   :  { %20 = vsyncpa [#allocation6 + $0x1], 0 }
   0xc   :  { %21 = vsyncpa [#allocation9], 0 }
   0xd   :  { %22 = vsyncpa [#allocation12], 0 }
   0xe   :  { %23 = vsyncpa [#allocation4], 0 }
   0xf   :  { %25 = vsyncpa [#allocation4 + $0x1], 0  ;;  %s2359_s13 = smov 0   ;;  %s2361_s14 = smov 0  }
  0x10   :  { %s2363_s15 = smov 0   ;;  %s2365_s16 = smov 0  }
  0x11   :  { %s2367_s17 = smov 0   ;;  %s2369_s18 = smov 0  }
  0x12 LB: > { %2855 = sst [smem:[#allocation20_spill]] %s2276_s16  ;;  %s2390_s19 = sadd.s32 4294967295, %s2284_s18   ;;  %s2284_s18 = sphi %s2369_s18, %s31_s18   ;;  %s2280_s17 = sphi %s2367_s17, %s2892_s17   ;;  %s2276_s16 = sphi %s2365_s16, %s2891_s16   ;;  %s2272_s15 = sphi %s2363_s15, %s2890_s15   ;;  %s2268_s14 = sphi %s2361_s14, %s2889_s14   ;;  %s2264_s13 = sphi %s2359_s13, %s2888_s13  }
  0x13   : > { %p1693_p0 = scmp.ge.s32.totalorder %s2284_s18, 1  ;;  %p2843_p1 = scmp.eq.s32.totalorder %s2390_s19, 0 }
  0x14   : > { %p298_p2 = scmp.lt.s32.totalorder %s2284_s18, 3  ;;  %s2286_s21 = smov [#allocation7]  }
  0x15   : > { %s310_s22 = sshll.u32 %s2286_s21, 4  ;;  %s2287_s24 = smov [#allocation8]   ;;  %s2399_s22 = int_to_ptr.vmem [resolvable:$true] %s310_s22 }
  0x16   : > { %p2395_p3 = pnand %p1693_p0, %p298_p2  ;;  %s326_s25 = sshll.u32 %s2287_s24, 4  ;;  %s2410_s25 = int_to_ptr.vmem [resolvable:$true] %s326_s25 }
  0x17   : > { %s2288_s26 = smov [#allocation10]   ;;  %s2858_s2 = sld [smem:[#allocation22_spill]] }
  0x18   : > { %s2856_s20 = scalar_select %p2395_p3, 1, 0 }
  0x19   : > { %p1901_p4 = pneg %p2395_p3  ;;  %s2412_s27 = sshll.u32 %s2288_s26, 4  ;;  %s343_s27 = int_to_ptr.vmem [resolvable:$true] %s2412_s27 }
  0x1b   : > { %p2406_p6 = pnand %p1901_p4, %p2843_p1 }
  0x1d   : > { %s2014_s30 = scalar_lea.hbm %s2858_s2, 512  ;;  %p2422_p8 = pneg %p2406_p6 }
  0x1e   : > { %p2015_p7 = scmp.ne.s32.totalorder %s2858_s2, %s2014_s30  ;;  %p2021_p11 = scmp.lt.u32.totalorder %s2014_s30, %s2858_s2 }
  0x20   : > { %p2017_p9 = pnand %p2422_p8, %p2015_p7 }
  0x22   : > { %p2018_p10 = pneg %p2017_p9 }
  0x24   : > { %p2023_p12 = pnand %p2021_p11, %p2018_p10 }
  0x26   : > { %2026 = shalt.err (!%p2023_p12)
}
  0x27   : > { %s2027_s28 = scalar_lea.vmem %s2399_s22, 512  ;;  %p2035_p4 = scmp.lt.s32.totalorder %s2399_s22, %s2399_s22 }
  0x28   : > { %p2028_p13 = scmp.ne.s32.totalorder %s2399_s22, %s2027_s28  ;;  %p2036_p5 = scmp.lt.s32.totalorder %s2027_s28, %s2027_s28 }
  0x2a   : > { %p2030_p0 = pnand %p2028_p13, %p2422_p8  ;;  %p2037_p7 = por %p2036_p5, %p2035_p4 }
  0x2c   : > { %p2031_p2 = pneg %p2030_p0 }
  0x2e   : > { %p2038_p9 = pnand %p2037_p7, %p2031_p2 }
  0x30   : > { %2041 = shalt.err (!%p2038_p9)
}
  0x31   : > { %s2289_s29 = smov 128   ;;  %s2290_s30 = smov 8  }
  0x32   : > { %1904 = dma.hbm_to_vmem [thread:$0]  (!%p2406_p6), %s2858_s2, 512, %s2399_s22, [#allocation6], %s2289_s29, %s2289_s29, %s2290_s30  }
  0x33   : > { %s2860_s4 = sld [smem:[#allocation23_spill]] }
  0x39   : > { %s2042_s28 = scalar_lea.hbm %s2860_s4, 512 }
  0x3a   : > { %p2043_p5 = scmp.ne.s32.totalorder %s2860_s4, %s2042_s28  ;;  %p2049_p12 = scmp.lt.u32.totalorder %s2042_s28, %s2860_s4 }
  0x3c   : > { %p2045_p10 = pnand %p2043_p5, %p2422_p8 }
  0x3e   : > { %p2046_p11 = pneg %p2045_p10 }
  0x40   : > { %p2051_p13 = pnand %p2049_p12, %p2046_p11 }
  0x42   : > { %2054 = shalt.err (!%p2051_p13)
}
  0x43   : > { %s2055_s22 = scalar_lea.vmem %s2410_s25, 512  ;;  %p2063_p7 = scmp.lt.s32.totalorder %s2410_s25, %s2410_s25 }
  0x44   : > { %p2056_p0 = scmp.ne.s32.totalorder %s2410_s25, %s2055_s22  ;;  %p2064_p9 = scmp.lt.s32.totalorder %s2055_s22, %s2055_s22 }
  0x46   : > { %p2058_p2 = pnand %p2056_p0, %p2422_p8  ;;  %p2065_p5 = por %p2064_p9, %p2063_p7 }
  0x48   : > { %p2059_p4 = pneg %p2058_p2 }
  0x4a   : > { %p2066_p10 = pnand %p2065_p5, %p2059_p4 }
  0x4c   : > { %2069 = shalt.err (!%p2066_p10)
}
  0x4d   : > { %1907 = dma.hbm_to_vmem [thread:$0]  (!%p2406_p6), %s2860_s4, 512, %s2410_s25, [#allocation9], %s2289_s29, %s2289_s29, %s2290_s30  }
  0x4e   : > { %s2861_s6 = sld [smem:[#allocation24_spill]] }
  0x54   : > { %s2070_s11 = scalar_lea.hbm %s2861_s6, 512 }
  0x55   : > { %p2071_p11 = scmp.ne.s32.totalorder %s2861_s6, %s2070_s11  ;;  %p2077_p0 = scmp.lt.u32.totalorder %s2070_s11, %s2861_s6 }
  0x57   : > { %p2073_p12 = pnand %p2071_p11, %p2422_p8 }
  0x59   : > { %p2074_p13 = pneg %p2073_p12 }
  0x5b   : > { %p2079_p2 = pnand %p2077_p0, %p2074_p13 }
  0x5d   : > { %2082 = shalt.err (!%p2079_p2)
}
  0x5e   : > { %s2083_s22 = scalar_lea.vmem %s343_s27, 512  ;;  %p2091_p5 = scmp.lt.s32.totalorder %s343_s27, %s343_s27 }
  0x5f   : > { %p2084_p4 = scmp.ne.s32.totalorder %s343_s27, %s2083_s22  ;;  %p2092_p10 = scmp.lt.s32.totalorder %s2083_s22, %s2083_s22 }
  0x61   : > { %p2086_p7 = pnand %p2084_p4, %p2422_p8  ;;  %p2093_p1 = por %p2092_p10, %p2091_p5 }
  0x63   : > { %p2087_p9 = pneg %p2086_p7 }
  0x65   : > { %p2094_p3 = pnand %p2093_p1, %p2087_p9 }
  0x67   : > { %2097 = shalt.err (!%p2094_p3)
}
  0x68   : > { %1910 = dma.hbm_to_vmem [thread:$0]  (!%p2406_p6), %s2861_s6, 512, %s343_s27, [#allocation9], %s2289_s29, %s2289_s29, %s2290_s30  }
  0x69   : > { %s2291_s9 = smov [#allocation11]   ;;  %s2862_s8 = sld [smem:[#allocation26_spill]] }
  0x6a   : > { %s358_s10 = sshll.u32 %s2291_s9, 4  ;;  %s359_s10 = int_to_ptr.vmem [resolvable:$true] %s358_s10 }
  0x6f   : > { %s2098_s12 = scalar_lea.hbm %s2862_s8, 512 }
  0x70   : > { %p2099_p1 = scmp.ne.s32.totalorder %s2862_s8, %s2098_s12  ;;  %p2105_p12 = scmp.lt.u32.totalorder %s2098_s12, %s2862_s8 }
  0x72   : > { %p2101_p3 = pnand %p2099_p1, %p2422_p8 }
  0x74   : > { %p2102_p11 = pneg %p2101_p3 }
  0x76   : > { %p2107_p13 = pnand %p2105_p12, %p2102_p11 }
  0x78   : > { %2110 = shalt.err (!%p2107_p13)
}
  0x79   : > { %s2111_s27 = scalar_lea.vmem %s359_s10, 512  ;;  %p2119_p7 = scmp.lt.s32.totalorder %s359_s10, %s359_s10 }
  0x7a   : > { %p2112_p0 = scmp.ne.s32.totalorder %s359_s10, %s2111_s27  ;;  %p2120_p9 = scmp.lt.s32.totalorder %s2111_s27, %s2111_s27 }
  0x7c   : > { %p2114_p2 = pnand %p2112_p0, %p2422_p8  ;;  %p2121_p5 = por %p2120_p9, %p2119_p7 }
  0x7e   : > { %p2115_p4 = pneg %p2114_p2 }
  0x80   : > { %p2122_p10 = pnand %p2121_p5, %p2115_p4 }
  0x82   : > { %2125 = shalt.err (!%p2122_p10)
}
  0x83   : > { %1913 = dma.hbm_to_vmem [thread:$0]  (!%p2406_p6), %s2862_s8, 512, %s359_s10, [#allocation12], %s2289_s29, %s2289_s29, %s2290_s30  }
  0x84   : > { %s1692_s23 = sadd.s32 4294967294, %s2284_s18   ;;  %s43_s21 = sadd.s32 1, %s2280_s17 }
  0x85   : > { %p45_p8 = scmp.ge.s32.totalorder %s43_s21, 2  ;;  %s52_s9 = sadd.s32 1, %s2272_s15 }
  0x86   : > { %p59_p1 = scmp.ne.s32.totalorder %s2272_s15, %s2268_s14  ;;  %p60_p3 = scmp.eq.s32.totalorder %s2284_s18, 0 }
  0x87   : > { %s2894_s21 = smov (%p45_p8, %s43_s21), 0  ;;  %p65_p12 = scmp.ne.s32.totalorder %s2268_s14, %s2264_s13 }
  0x88   : > { %2863 = sst [smem:[#allocation21_spill]] %s2894_s21  ;;  %p2523_p11 = por %p60_p3, %p59_p1 }
  0x89   : > { %s47_s29 = ssub.s32 %s2280_s17, %s2894_s21  ;;  %p285_p6 = scmp.eq.s32.totalorder %s2390_s19, 1 }
  0x8a   : > { %p50_p13 = scmp.eq.s32.totalorder %s47_s29, 0  ;;  %p2865_p0 = scmp.eq.s32.totalorder %s2390_s19, 0 }
  0x8b   : > { %p2538_p4 = por %p285_p6, %p59_p1  ;;  %p291_p7 = scmp.eq.s32.totalorder %s1692_s23, 1 }
  0x8c   : > { %p2534_p2 = por %p2865_p0, %p65_p12  ;;  %p1929_p5 = scmp.lt.s32.totalorder %s2284_s18, 2 }
  0x8d   : > { %s2867_s10 = scalar_select %p2538_p4, 1, 0 }
  0x8e   : > { %s2866_s30 = scalar_select %p2534_p2, 1, 0 }
  0x8f   : > { %s2543_s11 = scalar_select %p50_p13, %s2272_s15, %s52_s9  }
  0x90   : > { %p2545_p9 = por %p291_p7, %p65_p12  ;;  %s375_s24 = sand.u32 1, %s2272_s15  }
  0x91   : > { %s1700_s26 = sshll.u32 %s2280_s17, 7  ;;  %s2552_s28 = sshll.u32 %s375_s24, 3 }
  0x92   : > { %s2868_s12 = scalar_select %p2545_p9, 1, 0 }
  0x93   : > { %s2557_s25 = scalar_lea.hbm %s2831_s0, %s1700_s26  ;;  %s379_s7 = scalar_lea.vmem [#allocation2], %s2552_s28 }
  0x94   : > { %s387_s23 = sshll.u32 %s379_s7, 4  ;;  %p2562_p10 = pnand %p1929_p5, %p2523_p11  ;;  %s2566_s23 = int_to_ptr.vmem [resolvable:$true] %s387_s23 }
  0x95   : > { %s2571_s27 = scalar_lea.hbm %s2832_s1, %s1700_s26  ;;  %s376_s2 = scalar_lea.sflag [#allocation3], %s375_s24 }
  0x96   : > { %s2126_s4 = scalar_lea.hbm %s2557_s25, 128  ;;  %p2128_p1 = pneg %p2562_p10 }
  0x97   : > { %p2127_p8 = scmp.ne.s32.totalorder %s2557_s25, %s2126_s4  ;;  %s2131_s6 = scalar_lea.hbm %s2831_s0, 256 }
  0x98   : > { %p2132_p12 = scmp.lt.u32.totalorder %s2557_s25, %s2831_s0  ;;  %p2133_p6 = scmp.lt.u32.totalorder %s2131_s6, %s2126_s4 }
  0x99   : > { %p2129_p3 = pnand %p2128_p1, %p2127_p8  ;;  %p2135_p0 = scmp.lt.u32.totalorder %s2126_s4, %s2557_s25 }
  0x9a   : > { %p2134_p13 = por %p2133_p6, %p2132_p12 }
  0x9b   : > { %p2130_p11 = pneg %p2129_p3 }
  0x9c   : > { %p2136_p7 = por %p2135_p0, %p2134_p13 }
  0x9e   : > { %p2137_p5 = pnand %p2136_p7, %p2130_p11 }
  0xa0   : > { %2140 = shalt.err (!%p2137_p5)
}
  0xa1   : > { %s2141_s24 = scalar_lea.vmem %s2566_s23, 128  ;;  %s2292_s26 = smov [#allocation2]  }
  0xa2   : > { %p2142_p8 = scmp.ne.s32.totalorder %s2566_s23, %s2141_s24  ;;  %s2146_s29 = sshll.u32 %s2292_s26, 4  ;;  %s2147_s29 = int_to_ptr.vmem [resolvable:$false] %s2146_s29 }
  0xa3   : > { %s2148_s8 = scalar_lea.vmem %s2147_s29, 256  ;;  %p2149_p4 = scmp.lt.s32.totalorder %s2566_s23, %s2147_s29 }
  0xa4   : > { %p2144_p3 = pnand %p2142_p8, %p2128_p1  ;;  %p2150_p12 = scmp.lt.s32.totalorder %s2148_s8, %s2141_s24 }
  0xa6   : > { %p2145_p9 = pneg %p2144_p3  ;;  %p2151_p6 = por %p2150_p12, %p2149_p4 }
  0xa8   : > { %p2152_p13 = pnand %p2151_p6, %p2145_p9 }
  0xaa   : > { %2155 = shalt.err (!%p2152_p13)
}
  0xab   : > { %1917 = dma.hbm_to_vmem [thread:$0]  (!%p2562_p10), %s2557_s25, 128, %s2566_s23, %s376_s2  }
  0xac   : > { %s394_s4 = sand.u32 1, %s2284_s18   ;;  %s398_s6 = scalar_lea.vmem [#allocation5], %s2552_s28 }
  0xad   : > { %s405_s21 = sshll.u32 %s398_s6, 4  ;;  %s395_s22 = scalar_lea.sflag [#allocation6], %s394_s4  ;;  %s406_s21 = int_to_ptr.vmem [resolvable:$true] %s405_s21 }
  0xae   : > { %s2156_s16 = scalar_lea.hbm %s2571_s27, 128  ;;  %s2161_s26 = scalar_lea.hbm %s2832_s1, 256 }
  0xaf   : > { %p2157_p4 = scmp.ne.s32.totalorder %s2571_s27, %s2156_s16  ;;  %p2162_p0 = scmp.lt.u32.totalorder %s2571_s27, %s2832_s1 }
  0xb0   : > { %p2163_p7 = scmp.lt.u32.totalorder %s2161_s26, %s2156_s16  ;;  %p2165_p8 = scmp.lt.u32.totalorder %s2156_s16, %s2571_s27 }
  0xb1   : > { %p2159_p9 = pnand %p2157_p4, %p2128_p1 }
  0xb2   : > { %p2164_p5 = por %p2163_p7, %p2162_p0 }
  0xb3   : > { %p2160_p11 = pneg %p2159_p9 }
  0xb4   : > { %p2166_p3 = por %p2165_p8, %p2164_p5 }
  0xb6   : > { %p2167_p12 = pnand %p2166_p3, %p2160_p11 }
  0xb8   : > { %2170 = shalt.err (!%p2167_p12)
}
  0xb9   : > { %s2171_s2 = scalar_lea.vmem %s406_s21, 128  ;;  %s2293_s28 = smov [#allocation5]  }
  0xba   : > { %p2172_p6 = scmp.ne.s32.totalorder %s406_s21, %s2171_s2  ;;  %s2176_s25 = sshll.u32 %s2293_s28, 4  ;;  %s2177_s25 = int_to_ptr.vmem [resolvable:$false] %s2176_s25 }
  0xbb   : > { %s2178_s23 = scalar_lea.vmem %s2177_s25, 256  ;;  %p2179_p9 = scmp.lt.s32.totalorder %s406_s21, %s2177_s25 }
  0xbc   : > { %p2174_p13 = pnand %p2172_p6, %p2128_p1  ;;  %p2180_p2 = scmp.lt.s32.totalorder %s2178_s23, %s2171_s2 }
  0xbe   : > { %p2175_p4 = pneg %p2174_p13  ;;  %p2181_p0 = por %p2180_p2, %p2179_p9 }
  0xc0   : > { %p2182_p7 = pnand %p2181_p0, %p2175_p4 }
  0xc2   : > { %2185 = shalt.err (!%p2182_p7)
}
  0xc3   : > { %1920 = dma.hbm_to_vmem [thread:$0]  (!%p2562_p10), %s2571_s27, 128, %s406_s21, %s395_s22  }
  0xc4   : > { %p2870_p11 = scmp.ne.s32.totalorder %s2856_s20, 0 }
  0xc5   : > { %s2622_s4 = sand.u32 (!%p2870_p11), 1, %s2268_s14   ;;  %p2871_p2 = scmp.ne.s32.totalorder (!%p2870_p11), %s2866_s30, 0 }
  0xc6   : > { %414 = sbr.rel (%p2870_p11) target bundleno = 2085 (0x825), region = 60  ;;  %s2625_s6 = sshll.u32 (!%p2870_p11), %s2622_s4, 3 }
  0xc7   : > { %s417_s16 = scalar_lea.sflag (!%p2870_p11), [#allocation3], %s2622_s4  ;;  %s420_s7 = scalar_lea.vmem (!%p2870_p11), [#allocation2], %s2625_s6 }
  0xcd   : > { %2239 = dma.done.wait (%p2871_p2), %s417_s16, 128  }
  0xce   : > { %2241 = vsyncadd (%p2871_p2), %s417_s16, 4294967168  ;;  %s425_s20 = sand.u32 1, %s2390_s19   ;;  %s429_s27 = scalar_lea.vmem [#allocation5], %s2625_s6 }
  0xcf   : > { %s426_s9 = scalar_lea.sflag [#allocation6], %s425_s20 }
  0xd0   : > { %2243 = dma.done.wait (%p2871_p2), %s426_s9, 128  }
  0xd1   : > { %2245 = vsyncadd (%p2871_p2), %s426_s9, 4294967168  ;;  %p2872_p10 = scmp.eq.s32.totalorder %s2390_s19, 0 }
  0xd3   : > { %2247 = dma.done.wait (%p2872_p10), [#allocation6], 512   ;;  %p2873_p1 = pmov %p2872_p10 }
  0xd5   : > { %2249 = vsyncadd (%p2873_p1), [#allocation6], 4294966784  ;;  %p2874_p5 = pmov %p2873_p1 }
  0xd6   : > { %p2875_p8 = pmov %p2873_p1 }
  0xd7   : > { %2251 = dma.done.wait (%p2874_p5), [#allocation9], 1024  }
  0xd8   : > { %2253 = vsyncadd (%p2875_p8), [#allocation9], 4294966272  ;;  %p2876_p3 = pmov %p2873_p1 }
  0xd9   : > { %p2877_p12 = pmov %p2873_p1 }
  0xda   : > { %2255 = dma.done.wait (%p2876_p3), [#allocation12], 512  }
  0xdb   : > { %2257 = vsyncadd (%p2877_p12), [#allocation12], 4294966784  ;;  %v2294_v0 = vmov 0.0|0.0   ;;  %vm2295_vm0 = vmmov 0   ;;  %v2296_v1 = vmov 0.0   ;;  %v575_v2 = vld [vmem:[#allocation8] sm:$0xff]  ;;  %v741_v31 = vlaneseq }
  0xdc   : > { %1861 = vmatprep.subr.bf16.mxu1 %v2294_v0  ;;  %1855 = vmatprep.subr.bf16.mxu0 %v2294_v0  ;;  %v576_v3 = vld [vmem:[#allocation8 + $0x8] sm:$0xff]  ;;  %v489_v4 = vld [vmem:[#allocation7] sm:$0xff]  ;;  %v577_v7 = vld [vmem:[#allocation8 + $0x10] sm:$0xff]  ;;  %vm500_vm1 = vcmask 261120   ;;  %vm748_vm2 = vcmask 64512   ;;  %s2297_s24 = smov 120  }
  0xdd   : > { %1790 = vmatprep.mubr.msk.f32.mxu1 %vm2295_vm0, %v2296_v1  ;;  %1779 = vmatprep.mubr.msk.f32.mxu0 %vm2295_vm0, %v2296_v1  ;;  %v1862_v5 = vpack.c.bf16 %v576_v3, %v575_v2  ;;  %v490_v6 = vld [vmem:[#allocation7 + $0x8] sm:$0xff]  ;;  %v578_v8 = vld [vmem:[#allocation8 + $0x18] sm:$0xff]  ;;  %v491_v10 = vld [vmem:[#allocation7 + $0x10] sm:$0xff]  ;;  %s2298_s26 = smov 112   ;;  %s2299_s29 = smov 104   ;;  %v742_v32 = vshrl.u32 %v741_v31, 7 }
  0xde   : > { %v1856_v9 = vpack.c.bf16 %v490_v6, %v489_v4  ;;  %v492_v11 = vld [vmem:[#allocation7 + $0x18] sm:$0xff]  ;;  %v1865_v12 = vpack.c.bf16 %v578_v8, %v577_v7  ;;  %v487_v15 = vld [vmem:[%s420_s7] sm:$0xff]  ;;  %v661_v27 = vld [vmem:[#allocation10 + $0x10] sm:$0xff]  ;;  %v746_v33 = vand.u32 127, %v741_v31  ;;  %s2880_s28 = sld [smem:[#allocation25_spill]]  ;;  %s2300_s25 = smov 8  }
  0xdf   : > { %1863 = vmatpush3.bf16.msra.mxu1 %v1862_v5  ;;  %v1859_v13 = vpack.c.bf16 %v492_v11, %v491_v10  ;;  %v488_v14 = vld [vmem:[%s429_s27] sm:$0xff]  ;;  %v1713_v16 = vld [vmem:[%s2836_s5] ss:$0 sm:$0xff]  ;;  %v660_v26 = vld [vmem:[#allocation10 + $0x8] sm:$0xff]  ;;  %s2301_s23 = smov 16   ;;  %s2881_s16 = sld [smem:[#allocation20_spill]] }
  0xe0   : > { %1857 = vmatpush3.bf16.msra.mxu0 %v1856_v9  ;;  %1864 = vmatprep.subr.bf16.mxu1 %v2294_v0  ;;  %v1711_v17 = vld [vmem:[%s2834_s3] ss:$0 sm:$0xff]  ;;  %v662_v29 = vld [vmem:[#allocation10 + $0x18] sm:$0xff]  ;;  %vm2692_vm3 = vcmp.ge.s32.totalorder %v742_v32, %v746_v33  ;;  %s2302_s7 = smov 24   ;;  %vm1446_vm8 = vcmask 130048   ;;  %vm1448_vm9 = vcmask 195584  }
  0xe1   : > { %1858 = vmatprep.subr.bf16.mxu0 %v2294_v0  ;;  %v659_v25 = vld [vmem:[#allocation10] sm:$0xff]  ;;  %v1871_v30 = vpack.c.bf16 %v662_v29, %v661_v27  ;;  %s2882_s27 = sld [smem:[#allocation27_spill]]  ;;  %s486_s30 = scalar_lea.vmem [#allocation13], %s2625_s6 }
  0xe2   : > { %v1868_v28 = vpack.c.bf16 %v660_v26, %v659_v25  ;;  %s1550_s21 = sshll.u32 %s486_s30, 4  ;;  %s1536_s8 = scalar_lea.sflag [#allocation4], %s2622_s4  ;;  %s2783_s21 = int_to_ptr.vmem [resolvable:$true] %s1550_s21 }
  0xe3   : > { %1866 = vmatpush3.bf16.msra.mxu1 %v1865_v12  ;;  %s2186_s2 = scalar_lea.vmem %s2783_s21, 128  ;;  %p2884_p13 = scmp.ne.s32.totalorder %s2867_s10, 0 }
  0xe4   : > { %1860 = vmatpush3.bf16.msra.mxu0 %v1859_v13  ;;  %1804 = vmatprep.subr.mxu1 %v2296_v1  ;;  %v1715_v45 = vld [vmem:[%s2880_s28] ss:$0 sm:$0xff]  ;;  %p2187_p6 = scmp.ne.s32.totalorder %s2783_s21, %s2186_s2  ;;  %s2303_s6 = smov [#allocation13]  }
  0xe5   : > { %1867 = vmatprep.subr.bf16.mxu0 %v2294_v0  ;;  %s1732_s19 = sshll.u32 %s2881_s16, 7  ;;  %s2190_s28 = sshll.u32 %s2303_s6, 4  ;;  %s2191_s28 = int_to_ptr.vmem [resolvable:$false] %s2190_s28 }
  0xe6   : > { %1791 = vmatmul.mubr.msk.f32.vlgmr.msra.gmra.mrb[0].mxu1 %vm500_vm1, %v488_v14  ;;  %p2188_p4 = pnand %p2187_p6, %p2884_p13  ;;  %p2193_p0 = scmp.lt.s32.totalorder %s2783_s21, %s2191_s28 }
  0xe7   : > { %1780 = vmatmul.mubr.msk.f32.vlgmr.msra.gmra.mrb[0].mxu0 %vm500_vm1, %v487_v15  ;;  %1806 = vmatprep.mubr.msk.f32.mxu1 %vm2295_vm0, %v2296_v1 }
  0xe8   : > { %1801 = vmatprep.mubr.msk.f32.mxu0 %vm2295_vm0, %v2296_v1  ;;  %1869 = vmatpush3.bf16.msra.mxu0 %v1868_v28  ;;  %p2189_p9 = pneg %p2188_p4 }
  0xe9   : > { %1870 = vmatprep.subr.bf16.mxu0 %v2294_v0 }
  0xec   : > { %1872 = vmatpush3.bf16.msra.mxu0 %v1871_v30 }
  0xed   : > { %1824 = vmatprep.subr.mxu0 %v2296_v1 }
  0xef   : > { %1802 = vmatmul.mubr.msk.f32.vlgmr.msra.gmra.mrb[2].mxu0 %vm500_vm1, %v488_v14 }
  0xf0   : > { %1826 = vmatprep.mubr.msk.f32.mxu0 %vm2295_vm0, %v2296_v1 }
 0x1b9   : > { %v655_v18 = vpop.f32.mrb[0].mxu1 }
 0x1ba   : > { %v656_v19 = vadd.f32 %v1713_v16, %v655_v18  ;;  %v570_v20 = vpop.f32.mrb[0].mxu0  ;;  %v1792_v21 = vpop.f32.mrb[1].mxu1 }
 0x1bb   : > { %v571_v22 = vadd.f32 %v1711_v17, %v570_v20  ;;  %v1781_v23 = vpop.f32.mrb[1].mxu0 }
 0x1bc   : > { %918 = vrot.lane.b32.xlu1 %v656_v19, %s2297_s24  ;;  %1805 = vmatpush3.xpose.msk.msra.mxu1 %vm748_vm2, %v656_v19 }
 0x1bd   : > { %v574_v24 = vmul.f32 0.35355338, %v571_v22  ;;  %1809 = vmatprep.subr.mxu1 %v2296_v1 }
 0x1bf   : > { %1807 = vmatmul.mubr.msk.f32.vlgmr.msra.gmra.mrb[2].mxu1 %vm748_vm2, %v574_v24 }
 0x1c0   : > { %916 = vrot.lane.b32.xlu1 %v574_v24, %s2297_s24  ;;  %1811 = vmatprep.mubr.msk.f32.mxu1 %vm2295_vm0, %v2296_v1 }
 0x1c2   : > { %v736_v46 = vpop.f32.mrb[2].mxu0 }
 0x1c3   : > { %v2706_v47 = vadd.f32 %v1715_v45, %v736_v46  ;;  %v1803_v48 = vpop.f32.mrb[3].mxu0 }
 0x1c4   : > { %1089 = vrot.lane.b32.xlu1 %v574_v24, %s2298_s26  ;;  %v1450_v48 = vld [vmem:[#allocation11] sm:$0xff] }
 0x1c5   : > { %1810 = vmatpush3.msra.mxu1 %v2706_v47 }
 0x1c6   : > { %1814 = vmatprep.subr.mxu1 %v2296_v1 }
 0x1c8   : > { %1263 = vrot.lane.b32.xlu1 %v656_v19, %s2299_s29 }
 0x1cc   : > { %1261 = vrot.lane.b32.xlu1 %v574_v24, %s2299_s29 }
 0x22e   : > { %v919_v49 = vpop.permute.xlu1 %918 }
 0x232   : > { %v917_v50 = vpop.permute.xlu1 %916 }
 0x236   : > { %v1090_v51 = vpop.permute.xlu1 %1089 }
 0x23a   : > { %v1264_v55 = vpop.permute.xlu1 %1263 }
 0x23e   : > { %v1262_v56 = vpop.permute.xlu1 %1261 }
 0x292   : > { %v821_v35 = vpop.f32.mrb[2].mxu1 }
 0x293   : > { %v825_v36 = vsel %vm2692_vm3, %v821_v35, -1e+30  ;;  %v1808_v37 = vpop.f32.mrb[3].mxu1 }
 0x294   : > { %v826_v38 = vsel %vm748_vm2, %v825_v36, -inf }
 0x295   : > { %827 = vmax.xlane.f32.xlu0 %v826_v38 }
 0x322   : > { %v828_v39 = vpop.xlane.xlu0 %827 }
 0x323   : > { %v829_v40 = vsub.f32 %v825_v36, %v828_v39 }
 0x325   : > { %v830_v41 = vmul.f32 1.442695, %v829_v40 }
 0x327   : > { %1998 = vpow2.f32 %v830_v41 }
 0x331   : > { %v1999_v42 = vpop.eup %1998 }
 0x332   : > { %v832_v43 = vsel %vm2692_vm3, %v1999_v42, 0.0 }
 0x333   : > { %v833_v44 = vsel %vm748_vm2, %v832_v43, 0.0 }
 0x334   : > { %834 = vadd.xlane.f32.xlu0 %v833_v44 }
 0x34a   : > { %1091 = vrot.lane.b32.xlu0 %v656_v19, %s2298_s26 }
 0x3c1   : > { %v835_v52 = vpop.xlane.xlu0 %834 }
 0x3c2   : > { %vm836_vm4 = vcmp.gt.f32.partialorder %v835_v52, 0.0 }
 0x3c3   : > { %v837_v53 = vsel %vm836_vm4, %v835_v52, 1.0  ;;  %v1453_v52 = vld [vmem:[#allocation11 + $0x18] sm:$0xff] }
 0x3c4   : > { %2000 = vrcp.f32 %v837_v53 }
 0x3c5   : > { %v1092_v54 = vpop.permute.xlu0 %1091 }
 0x3c6   : > { %1825 = vmatpush3.xpose.msk.msra.mxu0 %vm748_vm2, %v1092_v54 }
 0x3c7   : > { %1834 = vmatprep.subr.mxu0 %v2296_v1 }
 0x3c9   : > { %1827 = vmatmul.mubr.msk.f32.vlgmr.msra.gmra.mrb[4].mxu0 %vm748_vm2, %v1090_v51  ;;  %v1452_v51 = vld [vmem:[#allocation11 + $0x10] sm:$0xff] }
 0x3ca   : > { %1835 = vmatpush3.xpose.msk.msra.mxu0 %vm748_vm2, %v1264_v55  ;;  %1836 = vmatprep.mubr.msk.f32.mxu0 %vm2295_vm0, %v2296_v1  ;;  %v1877_v53 = vpack.c.bf16 %v1453_v52, %v1452_v51 }
 0x3cb   : > { %1873 = vmatprep.subr.bf16.mxu0 %v2294_v0 }
 0x3cd   : > { %1837 = vmatmul.mubr.msk.f32.vlgmr.msra.gmra.mrb[6].mxu0 %vm748_vm2, %v1262_v56 }
 0x3ce   : > { %v2001_v57 = vpop.eup %2000  ;;  %1852 = vmatprep.mubr.msk.f32.mxu0 %vm2295_vm0, %v2296_v1 }
 0x3cf   : > { %v839_v58 = vmul.f32 %v2001_v57, %v832_v43 }
 0x3d1   : > { %v842_v59 = vsel %vm836_vm4, %v839_v58, 0.0 }
 0x3d2   : > { %1812 = vmatmul.mubr.msk.f32.vlgmr.msra.gmra.mrb[4].mxu1 %vm748_vm2, %v842_v59 }
 0x3d3   : > { %1815 = vmatpush3.xpose.msk.msra.mxu1 %vm748_vm2, %v919_v49  ;;  %1816 = vmatprep.mubr.msk.f32.mxu1 %vm2295_vm0, %v2296_v1  ;;  %v1451_v49 = vld [vmem:[#allocation11 + $0x8] sm:$0xff] }
 0x3d4   : > { %1819 = vmatprep.subr.mxu1 %v2296_v1 }
 0x3d6   : > { %1817 = vmatmul.mubr.msk.f32.vlgmr.msra.gmra.mrb[6].mxu1 %vm748_vm2, %v917_v50  ;;  %v1874_v50 = vpack.c.bf16 %v1451_v49, %v1450_v48 }
 0x3d7   : > { %1821 = vmatprep.mubr.msk.f32.mxu1 %vm2295_vm0, %v2296_v1 }
 0x3d8   : > { %1875 = vmatpush3.bf16.msra.mxu0 %v1874_v50 }
 0x3d9   : > { %1876 = vmatprep.subr.bf16.mxu0 %v2294_v0 }
 0x3dc   : > { %1878 = vmatpush3.bf16.msra.mxu0 %v1877_v53 }
 0x49c   : > { %v1163_v60 = vpop.f32.mrb[4].mxu0 }
 0x49d   : > { %v1167_v61 = vsel %vm2692_vm3, %v1163_v60, -1e+30  ;;  %v1828_v62 = vpop.f32.mrb[5].mxu0 }
 0x49e   : > { %v1168_v63 = vsel %vm748_vm2, %v1167_v61, -inf }
 0x49f   : > { %1169 = vmax.xlane.f32.xlu0 %v1168_v63 }
 0x4a0   : > { %v1335_v2 = vpop.f32.mrb[6].mxu0 }
 0x4a1   : > { %v1838_v3 = vpop.f32.mrb[7].mxu0  ;;  %v1339_v10 = vsel %vm2692_vm3, %v1335_v2, -1e+30  ;;  %v1729_v2 = vld [vmem:[%s2882_s27] ss:$0 sm:$0xff] }
 0x4a2   : > { %v1340_v11 = vsel %vm748_vm2, %v1339_v10, -inf }
 0x4a5   : > { %v2733_v4 = vpop.f32.mrb[4].mxu1 }
 0x4a6   : > { %v1813_v5 = vpop.f32.mrb[5].mxu1 }
 0x4a9   : > { %v990_v6 = vpop.f32.mrb[6].mxu1 }
 0x4aa   : > { %v994_v7 = vsel %vm2692_vm3, %v990_v6, -1e+30  ;;  %v1818_v8 = vpop.f32.mrb[7].mxu1 }
 0x4ab   : > { %v995_v9 = vsel %vm748_vm2, %v994_v7, -inf }
 0x4ac   : > { %996 = vmax.xlane.f32.xlu1 %v995_v9 }
 0x4b0   : > { %1341 = vmax.xlane.f32.xlu1 %v1340_v11 }
 0x52c   : > { %v1170_v12 = vpop.xlane.xlu0 %1169 }
 0x52d   : > { %v1171_v13 = vsub.f32 %v1167_v61, %v1170_v12 }
 0x52f   : > { %v1172_v14 = vmul.f32 1.442695, %v1171_v13 }
 0x531   : > { %2002 = vpow2.f32 %v1172_v14 }
 0x539   : > { %v997_v15 = vpop.xlane.xlu1 %996 }
 0x53a   : > { %v998_v16 = vsub.f32 %v994_v7, %v997_v15 }
 0x53b   : > { %v2003_v17 = vpop.eup %2002 }
 0x53c   : > { %v1174_v18 = vsel %vm2692_vm3, %v2003_v17, 0.0  ;;  %v999_v19 = vmul.f32 1.442695, %v998_v16 }
 0x53d   : > { %v1342_v20 = vpop.xlane.xlu1 %1341  ;;  %v1175_v21 = vsel %vm748_vm2, %v1174_v18, 0.0 }
 0x53e   : > { %v1343_v22 = vsub.f32 %v1339_v10, %v1342_v20  ;;  %1176 = vadd.xlane.f32.xlu0 %v1175_v21  ;;  %2004 = vpow2.f32 %v999_v19 }
 0x540   : > { %v1344_v23 = vmul.f32 1.442695, %v1343_v22 }
 0x542   : > { %2006 = vpow2.f32 %v1344_v23 }
 0x548   : > { %v2005_v24 = vpop.eup %2004 }
 0x549   : > { %v1001_v28 = vsel %vm2692_vm3, %v2005_v24, 0.0 }
 0x54a   : > { %v1002_v29 = vsel %vm748_vm2, %v1001_v28, 0.0 }
 0x54c   : > { %v2007_v25 = vpop.eup %2006 }
 0x54d   : > { %v1346_v26 = vsel %vm2692_vm3, %v2007_v25, 0.0 }
 0x54e   : > { %v1347_v27 = vsel %vm748_vm2, %v1346_v26, 0.0 }
 0x54f   : > { %1348 = vadd.xlane.f32.xlu1 %v1347_v27 }
 0x553   : > { %1003 = vadd.xlane.f32.xlu1 %v1002_v29 }
 0x554   : > { %1013 = vrot.lane.b32.xlu0 %v2706_v47, %s2297_s24 }
 0x564   : > { %1185 = vrot.lane.b32.xlu1 %v2706_v47, %s2298_s26  ;;  %s2883_s26 = sld [smem:[#allocation28_spill]] }
 0x568   : > { %1357 = vrot.lane.b32.xlu1 %v2706_v47, %s2299_s29 }
 0x56a   : > { %s2781_s29 = scalar_lea.hbm %s2883_s26, %s1732_s19 }
 0x5cb   : > { %v1177_v30 = vpop.xlane.xlu0 %1176 }
 0x5cc   : > { %vm1178_vm5 = vcmp.gt.f32.partialorder %v1177_v30, 0.0 }
 0x5cd   : > { %v1179_v33 = vsel %vm1178_vm5, %v1177_v30, 1.0 }
 0x5ce   : > { %2008 = vrcp.f32 %v1179_v33 }
 0x5cf   : > { %v1014_v31 = vpop.permute.xlu0 %1013 }
 0x5d0   : > { %1820 = vmatpush3.msra.mxu1 %v1014_v31 }
 0x5d1   : > { %1829 = vmatprep.subr.mxu1 %v2296_v1 }
 0x5d8   : > { %v2009_v37 = vpop.eup %2008 }
 0x5d9   : > { %v1181_v41 = vmul.f32 %v2009_v37, %v1174_v18 }
 0x5db   : > { %v1184_v44 = vsel %vm1178_vm5, %v1181_v41, 0.0 }
 0x5dc   : > { %v1349_v32 = vpop.xlane.xlu1 %1348 }
 0x5dd   : > { %vm1350_vm6 = vcmp.gt.f32.partialorder %v1349_v32, 0.0 }
 0x5de   : > { %v1351_v36 = vsel %vm1350_vm6, %v1349_v32, 1.0 }
 0x5e0   : > { %v1004_v34 = vpop.xlane.xlu1 %1003 }
 0x5e1   : > { %vm1005_vm7 = vcmp.gt.f32.partialorder %v1004_v34, 0.0 }
 0x5e2   : > { %v1006_v35 = vsel %vm1005_vm7, %v1004_v34, 1.0 }
 0x5e3   : > { %2010 = vrcp.f32 %v1006_v35 }
 0x5e4   : > { %2012 = vrcp.f32 %v1351_v36  ;;  %v1186_v40 = vpop.permute.xlu1 %1185 }
 0x5e8   : > { %v1358_v46 = vpop.permute.xlu1 %1357 }
 0x5ed   : > { %v2011_v38 = vpop.eup %2010 }
 0x5ee   : > { %v1008_v39 = vmul.f32 %v2011_v38, %v1001_v28  ;;  %v2013_v43 = vpop.eup %2012 }
 0x5ef   : > { %v1353_v45 = vmul.f32 %v2013_v43, %v1346_v26 }
 0x5f0   : > { %v1011_v42 = vsel %vm1005_vm7, %v1008_v39, 0.0 }
 0x5f1   : > { %1822 = vmatmul.mubr.msk.f32.vlgmr.msra.gmra.mrb[8].mxu1 %vm748_vm2, %v1011_v42  ;;  %v1356_v47 = vsel %vm1350_vm6, %v1353_v45, 0.0 }
 0x5f2   : > { %1830 = vmatpush3.msra.mxu1 %v1186_v40  ;;  %1831 = vmatprep.mubr.msk.f32.mxu1 %vm2295_vm0, %v2296_v1 }
 0x5f3   : > { %1839 = vmatprep.subr.mxu1 %v2296_v1 }
 0x5f5   : > { %1832 = vmatmul.mubr.msk.f32.vlgmr.msra.gmra.mrb[10].mxu1 %vm748_vm2, %v1184_v44 }
 0x5f6   : > { %1840 = vmatpush3.msra.mxu1 %v1358_v46  ;;  %1841 = vmatprep.mubr.msk.f32.mxu1 %vm2295_vm0, %v2296_v1 }
 0x5f9   : > { %1842 = vmatmul.mubr.msk.f32.vlgmr.msra.gmra.mrb[12].mxu1 %vm748_vm2, %v1356_v47 }
 0x6c4   : > { %v1085_v54 = vpop.f32.mrb[8].mxu1 }
 0x6c5   : > { %1434 = vrot.lane.b32.xlu0 %v1085_v54, %s2300_s25  ;;  %v1823_v55 = vpop.f32.mrb[9].mxu1  ;;  %s2192_s25 = scalar_lea.vmem %s2191_s28, 256 }
 0x6c6   : > { %p2194_p7 = scmp.lt.s32.totalorder %s2192_s25, %s2186_s2 }
 0x6c8   : > { %v1257_v56 = vpop.f32.mrb[10].mxu1  ;;  %p2195_p11 = por %p2194_p7, %p2193_p0 }
 0x6c9   : > { %1438 = vrot.lane.b32.xlu1 %v1257_v56, %s2301_s23  ;;  %v1833_v1 = vpop.f32.mrb[11].mxu1 }
 0x6ca   : > { %p2196_p2 = pnand %p2195_p11, %p2189_p9 }
 0x6cc   : > { %v1429_v57 = vpop.f32.mrb[12].mxu1 }
 0x6cd   : > { %1442 = vrot.lane.b32.xlu0 %v1429_v57, %s2302_s7  ;;  %v1843_v58 = vpop.f32.mrb[13].mxu1 }
 0x737   : > { %v1435_v59 = vpop.permute.xlu0 %1434 }
 0x738   : > { %v1445_v60 = vsel %vm748_vm2, %v2733_v4, %v1435_v59 }
 0x73b   : > { %v1439_v0 = vpop.permute.xlu1 %1438 }
 0x73c   : > { %v1447_v61 = vsel %vm1446_vm8, %v1445_v60, %v1439_v0 }
 0x73f   : > { %v1443_v62 = vpop.permute.xlu0 %1442 }
 0x740   : > { %v1449_v63 = vsel %vm1448_vm9, %v1447_v61, %v1443_v62 }
 0x741   : > { %1853 = vmatmul.mubr.msk.f32.vlgmr.msra.gmra.mrb[8].mxu0 %vm500_vm1, %v1449_v63 }
 0x814   : > { %v1530_v3 = vpop.f32.mrb[8].mxu0 }
 0x815   : > { %v1531_v5 = vadd.f32 %v1729_v2, %v1530_v3  ;;  %v1854_v6 = vpop.f32.mrb[9].mxu0 }
 0x817   : > { %1534 = vst.msk [vmem:[%s486_s30] sm:$0xff] %vm500_vm1, %v1531_v5 }
 0x818   : > { %2199 = shalt.err (!%p2196_p2)
}
 0x819   : > { %s2200_s4 = scalar_lea.hbm %s2781_s29, 128  ;;  %s2204_s7 = scalar_lea.hbm %s2883_s26, 256 }
 0x81a   : > { %p2201_p10 = scmp.ne.s32.totalorder %s2781_s29, %s2200_s4  ;;  %p2205_p8 = scmp.lt.u32.totalorder %s2781_s29, %s2883_s26 }
 0x81b   : > { %p2206_p3 = scmp.lt.u32.totalorder %s2204_s7, %s2200_s4  ;;  %p2208_p6 = scmp.lt.u32.totalorder %s2200_s4, %s2781_s29 }
 0x81c   : > { %p2202_p1 = pnand %p2201_p10, %p2884_p13 }
 0x81d   : > { %p2207_p12 = por %p2206_p3, %p2205_p8 }
 0x81e   : > { %p2203_p5 = pneg %p2202_p1 }
 0x81f   : > { %p2209_p4 = por %p2208_p6, %p2207_p12 }
 0x821   : > { %p2210_p9 = pnand %p2209_p4, %p2203_p5 }
 0x823   : > { %2213 = shalt.err (!%p2210_p9)
}
 0x824   : > { %1899 = dma.vmem_to_hbm [thread:$0]  (%p2884_p13), %s2783_s21, 128, %s2781_s29, %s1536_s8  }
 0x825 PF: > { %s1562_s27 = sand.u32 1, %s2264_s13   ;;  %p2885_p0 = scmp.ne.s32.totalorder %s2868_s12, 0 }
 0x826   : > { %p2886_p7 = scmp.ge.s32.totalorder %s2284_s18, 2  ;;  %s1563_s19 = scalar_lea.sflag [#allocation4], %s1562_s27 }
 0x828   : > { %p1922_p11 = pnand %p2886_p7, %p2885_p0 }
 0x82a   : > { %2259 = dma.done.wait (!%p1922_p11), %s1563_s19, 128  }
 0x82b   : > { %2261 = vsyncadd (!%p1922_p11), %s1563_s19, 4294967168  ;;  %s31_s18 = sadd.s32 1, %s2284_s18   ;;  %s2887_s10 = sld [smem:[#allocation21_spill]] }
 0x82c   : > { %p28_p2 = scmp.ge.s32.totalorder %s31_s18, 4   ;;  %s2888_s13 = smov %s2268_s14 }
 0x82d   : > { %s2889_s14 = smov %s2272_s15  ;;  %s2890_s15 = smov %s2543_s11 }
 0x82e   : > { %s2891_s16 = smov %s2280_s17  ;;  %30 = sbr.rel (!%p28_p2) target bundleno = 18 (0x12), region = 134 }
 0x831   : > { %s2892_s17 = smov %s2887_s10 }
 0x835   :  { %1568 = vsyncpa [#allocation3], 1 }
 0x836   :  { %1570 = vsyncpa [#allocation3 + $0x1], 1 }
 0x837   :  { %1571 = vsyncpa [#allocation6], 1 }
 0x838   :  { %1573 = vsyncpa [#allocation6 + $0x1], 1 }
 0x839   :  { %1574 = vsyncpa [#allocation9], 1 }
 0x83a   :  { %1575 = vsyncpa [#allocation12], 1 }
 0x83b   :  { %1576 = vsyncpa [#allocation4], 1 }
 0x83c   :  { %1578 = vsyncpa [#allocation4 + $0x1], 1 }

</bundles_post_ra>
